<compile_context>
chip_gen: v7x
topology: tpu7x:2x2x1
jax: 0.10.0
libtpu: 0.0.40
codegen_flags: <defaults>
</compile_context>

<pallas_src>
import math
import functools

import jax
import jax.numpy as jnp
from jax.experimental import pallas as pl
from jax.experimental.pallas import tpu as pltpu


def _pe_add_kernel(x_ref, pe_ref, o_ref, *, batch, d_model):
    # x_ref / o_ref : (tile_s, B*D)   lane-dense flattened blocks
    # pe_ref        : (tile_s, D)
    pe = pe_ref[...]                      # loaded once per block
    if batch == 1:
        o_ref[...] = x_ref[...] + pe
    else:
        # Static unrolled loop over batch: each step is one (tile_s, D) add,
        # result[s, b*D + d] = x[s, b*D + d] + pe[s, d]. No tiled pe temp.
        for b in range(batch):
            sl = pl.ds(b * d_model, d_model)   # static offset, compiler sees it
            o_ref[:, sl] = x_ref[:, sl] + pe


def make_positional_encoding_table(
    d_model: int,
    max_len: int = 5000,
    *,
    pos_weight: float = 1.0,
    dtype=jnp.float32,
) -> jnp.ndarray:
    """pe table [max_len, d_model] with pos_weight folded in (computed in f32,
    then cast once to the compute dtype at init, not per forward call)."""
    position = jnp.arange(max_len, dtype=jnp.float32)[:, None]            # (L, 1)
    div_term = jnp.exp(
        jnp.arange(0, d_model, 2, dtype=jnp.float32)
        * (-math.log(10000.0) / d_model)
    )                                                                     # (D/2,)
    angles = position * div_term                                          # (L, D/2)
    pe = jnp.zeros((max_len, d_model), dtype=jnp.float32)
    pe = pe.at[:, 0::2].set(jnp.sin(angles))
    pe = pe.at[:, 1::2].set(jnp.cos(angles))
    if pos_weight != 1.0:
        pe = pe * jnp.float32(pos_weight)   # fold static weight before the cast
    return pe.astype(dtype)


def _hw_params():
    """Generation-dependent tiling knobs (defensive: falls back if query fails)."""
    vmem_cap = 128 << 20
    try:
        info = pltpu.get_tpu_info()
        vmem_cap = int(getattr(info, "vmem_capacity_bytes", vmem_cap))
    except Exception:
        pass
    if vmem_cap <= (64 << 20):
        # v7x-class: 64 MiB VMEM per TC, 3.2 TB/s HBM, 2 TensorCores.
        return {"target_bytes": 6 << 20, "vmem_limit": 44 << 20, "min_steps": 4}
    # v5e / v6e: 128 MiB VMEM. ~3 MiB blocks are at/near the roofline knee and
    # the explicit 32 MiB limit is safe on both (v5e default scoped is 16 MiB).
    return {"target_bytes": 3 << 20, "vmem_limit": 32 << 20, "min_steps": 2}


def _choose_tile_s(S, BD, D, itemsize, *, target_bytes, vmem_budget, min_steps):
    """Sequence tile: ~target_bytes of x per block, rounded to the dtype's
    native sublane packing, >= min_steps grid steps when S allows it, and
    clamped so double-buffered in+out+pe fits the VMEM budget."""
    packing = max(8, 32 // max(1, itemsize))      # 8 f32, 16 bf16, 32 int8/fp8
    row_bytes = BD * itemsize
    t = max(packing, target_bytes // max(1, row_bytes))
    t = min(t, S)
    if S >= min_steps * packing:
        t = min(t, -(-S // min_steps))            # >= min_steps grid steps

    def step_bytes(tt):                           # double-buffered x + out + pe
        return 2 * (2 * tt * BD * itemsize + tt * D * itemsize)

    while t > packing and step_bytes(t) > vmem_budget:
        t -= packing
    t = max(packing, (t // packing) * packing)    # sublane-packing aligned
    return int(min(t, S))


def positional_encoding_forward(
    x: jnp.ndarray,
    pe: jnp.ndarray,
    *,
    tile_s: int | None = None,
    use_kernel: bool | None = None,
    donate_x: bool = False,
) -> jnp.ndarray:
    """x: [seq_len, batch, d_model]; pe: [max_len, d_model] (pos_weight folded).

    use_kernel: None = auto (XLA fast path for tiny / non-128-multiple B*D),
    True = force Pallas kernel, False = force plain XLA add.
    """
    S, B, D = x.shape
    assert pe.shape[0] >= S and pe.shape[1] == D
    dtype = x.dtype
    if pe.dtype != dtype:
        pe = pe.astype(dtype)   # should already be in compute dtype from init

    itemsize = jnp.dtype(dtype).itemsize
    BD = B * D

    # Small-shape / unaligned fast path: masked stores + fixed pallas_call
    # overhead would dominate; a fused XLA add is as fast or faster there.
    small = (BD % 128 != 0) or (S * BD * itemsize < (1 << 20))
    if use_kernel is False or (use_kernel is None and small):
        return x + pe[:S][:, None, :]

    hw = _hw_params()
    x2d = x.reshape(S, BD)                 # free contiguous reshape (lane-dense)

    if tile_s is None:
        tile_s = _choose_tile_s(
            S, BD, D, itemsize,
            target_bytes=hw["target_bytes"],
            vmem_budget=int(hw["vmem_limit"] * 0.75),
            min_steps=hw["min_steps"],
        )
    tile_s = int(min(tile_s, S))

    # pe operand: pass the full (max_len, D) table (no per-call slice) whenever
    # the tile is hardware-aligned; only the degenerate tiny-S case needs a slice
    # so the block's first dim equals the full array dim.
    if tile_s % 8 == 0 or tile_s == pe.shape[0]:
        pe_arg = pe
    else:
        pe_arg = pe[:S]

    grid = (pl.cdiv(S, tile_s),)
    kernel = functools.partial(_pe_add_kernel, batch=B, d_model=D)

    out2d = pl.pallas_call(
        kernel,
        out_shape=jax.ShapeDtypeStruct((S, BD), dtype),
        grid_spec=pl.GridSpec(
            grid=grid,
            in_specs=[
                pl.BlockSpec((tile_s, BD), lambda i: (i, 0)),
                pl.BlockSpec((tile_s, D), lambda i: (i, 0)),
            ],
            out_specs=pl.BlockSpec((tile_s, BD), lambda i: (i, 0)),
        ),
        compiler_params=pltpu.CompilerParams(
            dimension_semantics=("parallel",),
            vmem_limit_bytes=int(hw["vmem_limit"]),
        ),
        # Optionally reuse x's HBM buffer for the output (caller must not
        # need x afterwards).
        input_output_aliases=({0: 0} if donate_x else {}),
    )(x2d, pe_arg)

    return out2d.reshape(S, B, D)


if __name__ == "__main__":
    # Small shapes consistent with the module: [seq_len, batch, d_model]
    seq_len, batch, d_model = 8, 2, 32
    max_len = 64
    pos_weight = 1.0

    key = jax.random.PRNGKey(0)
    x = jax.random.normal(key, (seq_len, batch, d_model), dtype=jnp.float32)
    pe = make_positional_encoding_table(
        d_model, max_len, pos_weight=pos_weight, dtype=x.dtype
    )

    out = positional_encoding_forward(x, pe, use_kernel=True)  # force Pallas path
    out = jax.block_until_ready(out)

    # Pure-JAX reference (eval-mode dropout = identity)
    ref = x + pe[:seq_len, None, :]
    assert out.shape == (seq_len, batch, d_model)
    assert jnp.allclose(out, ref, atol=1e-6, rtol=1e-6), "mismatch vs reference"

    # Second check: multi-step grid with a masked boundary block, lane-aligned
    # D (multiple of 128), batch > 1 (exercises the unrolled per-batch adds),
    # pos_weight != 1 folded into the table at init.
    S2, B2, D2 = 40, 4, 128
    x2 = jax.random.normal(jax.random.PRNGKey(1), (S2, B2, D2), dtype=jnp.float32)
    pe2 = make_positional_encoding_table(D2, 64, pos_weight=0.5, dtype=x2.dtype)
    out2 = jax.block_until_ready(
        positional_encoding_forward(x2, pe2, tile_s=24, use_kernel=True)
    )
    ref2 = x2 + pe2[:S2, None, :]
    assert jnp.allclose(out2, ref2, atol=1e-6, rtol=1e-6), "mismatch vs reference (2)"

    print("KERNEL_OK")
</pallas_src>

<mosaic_0001>
module attributes {stable_mosaic.version = 11 : i64} {
  func.func @_pe_add_kernel(%arg0: i32, %arg1: memref<8x64xf32, #tpu.memory_space<vmem>>, %arg2: memref<8x32xf32, #tpu.memory_space<vmem>>, %arg3: memref<8x64xf32, #tpu.memory_space<vmem>>) attributes {dimension_semantics = [#tpu.dimension_semantics<parallel>], iteration_bounds = array<i64: 1>, scalar_prefetch = 0 : i64, scratch_operands = 0 : i64, tpu.core_type = #tpu.core_type<tc>, window_params = [{transform_indices = @transform_0, window_bounds = array<i64: 8, 64>}, {transform_indices = @transform_1, window_bounds = array<i64: 8, 32>}, {transform_indices = @transform_2, window_bounds = array<i64: 8, 64>}]} {
    %c0 = arith.constant 0 : index
    %c0_0 = arith.constant 0 : index
    %0 = vector.load %arg2[%c0, %c0_0] : memref<8x32xf32, #tpu.memory_space<vmem>>, vector<8x32xf32>
    %c0_1 = arith.constant 0 : index
    %c0_2 = arith.constant 0 : index
    %1 = vector.load %arg1[%c0_1, %c0_2] : memref<8x64xf32, #tpu.memory_space<vmem>>, vector<8x32xf32>
    %2 = arith.addf %1, %0 : vector<8x32xf32>
    %c0_3 = arith.constant 0 : index
    %c0_4 = arith.constant 0 : index
    %3 = vector.load %arg3[%c0_3, %c0_4] : memref<8x64xf32, #tpu.memory_space<vmem>>, vector<8x32xf32>
    tpu.vector_store %arg3[%c0_3, %c0_4], %2 {strides = array<i32>} : memref<8x64xf32, #tpu.memory_space<vmem>>, vector<8x32xf32>,
    %c0_5 = arith.constant 0 : index
    %c32 = arith.constant 32 : index
    %4 = vector.load %arg1[%c0_5, %c32] : memref<8x64xf32, #tpu.memory_space<vmem>>, vector<8x32xf32>
    %5 = arith.addf %4, %0 : vector<8x32xf32>
    %c0_6 = arith.constant 0 : index
    %c32_7 = arith.constant 32 : index
    %6 = vector.load %arg3[%c0_6, %c32_7] : memref<8x64xf32, #tpu.memory_space<vmem>>, vector<8x32xf32>
    tpu.vector_store %arg3[%c0_6, %c32_7], %5 {strides = array<i32>} : memref<8x64xf32, #tpu.memory_space<vmem>>, vector<8x32xf32>,
    return
  }
  func.func @transform_0(%arg0: i32) -> (i32, i32) {
    %c0_i32 = arith.constant 0 : i32
    %c0_i32_0 = arith.constant 0 : i32
    return %arg0, %c0_i32 : i32, i32
  }
  func.func @transform_1(%arg0: i32) -> (i32, i32) {
    %c0_i32 = arith.constant 0 : i32
    %c0_i32_0 = arith.constant 0 : i32
    return %arg0, %c0_i32 : i32, i32
  }
  func.func @transform_2(%arg0: i32) -> (i32, i32) {
    %c0_i32 = arith.constant 0 : i32
    %c0_i32_0 = arith.constant 0 : i32
    return %arg0, %c0_i32 : i32, i32
  }
}

</mosaic_0001>

<bundles_post_ra>
// kernel: tpu_custom_call.1
= control target key start
LH: loop header
LB: loop body
LE: loop exit
PB: predicated region body
PF: predicated region fallthrough
CT: control target
= control target key end

     0   :  { %vm15_vm0 = vcmask 261120   ;;  %s100_s0 = inlined_call_operand.vmem [shape: f32[8,64], index: 0, kind: input, shape index: {}]   ;;  %s101_s1 = inlined_call_operand.vmem [shape: f32[64,32], index: 1, kind: input, shape index: {}]   ;;  %s102_s2 = inlined_call_operand.hbm [shape: f32[8,64], index: 2, kind: output, shape index: {}]  }
   0x1   :  { %v12_v0 = vld [vmem:[%s101_s1] sm:$0xff] }
   0x2   :  { %v13_v1 = vld [vmem:[%s100_s0] sm:$0xff] }
   0x3   :  { %7 = vsyncpa [#allocation3], 0  ;;  %v14_v2 = vadd.f32 %v13_v1, %v12_v0  ;;  %s65_s13 = smov 32   ;;  %s66_s14 = smov [#allocation2]   ;;  %vm23_vm1 = vcmask 523520  }
   0x4   :  { %19 = vrot.lane.b32.xlu0 %v12_v0, %s65_s13  ;;  %s31_s15 = sshll.u32 %s66_s14, 4  ;;  %s32_s15 = int_to_ptr.vmem [resolvable:$true] %s31_s15 }
   0x5   :  { %16 = vst.msk [vmem:[#allocation2] sm:$0xff] %vm15_vm0, %v14_v2  ;;  %s41_s16 = scalar_lea.vmem %s32_s15, 128  ;;  %p46_p1 = scmp.lt.s32.totalorder %s32_s15, %s32_s15 }
   0x6   :  { %p42_p0 = scmp.ne.s32.totalorder %s32_s15, %s41_s16  ;;  %p47_p2 = scmp.lt.s32.totalorder %s41_s16, %s41_s16 }
   0x8   :  { %p48_p3 = por %p47_p2, %p46_p1 }
   0xa   :  { %p49_p4 = pnand %p48_p3, %p42_p0 }
  0x76   :  { %v20_v3 = vpop.permute.xlu0 %19 }
  0x77   :  { %v22_v4 = vadd.f32 %v20_v3, %v13_v1 }
  0x79   :  { %24 = vst.msk [vmem:[#allocation2] sm:$0xff] %vm23_vm1, %v22_v4 }
  0x7a   :  { %52 = shalt.err (!%p49_p4)
}
  0x7b   :  { %s53_s17 = scalar_lea.hbm %s102_s2, 128 }
  0x7c   :  { %p54_p5 = scmp.ne.s32.totalorder %s102_s2, %s53_s17  ;;  %p57_p6 = scmp.lt.u32.totalorder %s53_s17, %s102_s2 }
  0x7e   :  { %p59_p7 = pnand %p57_p6, %p54_p5 }
  0x80   :  { %62 = shalt.err (!%p59_p7)
}
  0x81   :  { %34 = dma.vmem_to_hbm [thread:$0]  %s32_s15, 128, %s102_s2, [#allocation3]  }
  0x82   :  { %63 = dma.done.wait [#allocation3], 128  }
  0x83   :  { %64 = vsyncadd [#allocation3], 4294967168 }
  0x84   :  { %38 = vsyncpa [#allocation3], 1 }

</bundles_post_ra>
